<compile_context>
chip_gen: v5e
topology: v5e:2x2
jax: 0.10.0
libtpu: 0.0.40
codegen_flags: <defaults>
</compile_context>

<pallas_src>
import jax
import jax.numpy as jnp
from jax.experimental import pallas as pl
from jax.experimental.pallas import tpu as pltpu


def ddlayer_kernel(x_ref, wb_ref, bb_ref, w1_ref, b1_ref,
                   w2_ref, b2_ref, wo_ref, bo_ref, out_ref):
    x = x_ref[...]                                                   # [TN, F]
    # fused branch linears: [TN, B*O]
    h = jnp.dot(x, wb_ref[...], preferred_element_type=jnp.float32) + bb_ref[...]
    # fused branch_nonlinear: Linear -> ReLU -> Linear (block-diagonal weights)
    h = jnp.dot(h, w1_ref[...], preferred_element_type=jnp.float32) + b1_ref[...]
    h = jnp.maximum(h, 0.0)
    h = jnp.dot(h, w2_ref[...], preferred_element_type=jnp.float32) + b2_ref[...]
    # output layer (softmax gates pre-folded into wo columns): [TN, O]
    out_ref[...] = (jnp.dot(h, wo_ref[...], preferred_element_type=jnp.float32)
                    + bo_ref[...]).astype(out_ref.dtype)


def _round_up(a, b):
    return (a + b - 1) // b * b


def fuse_params(p):
    """One-time host-side fusion: pre-transpose + concat / block-diag + gate fold."""
    wb, bb = p["wb"], p["bb"]            # [B, O, F], [B, 1, O]
    w1, b1 = p["w1"], p["b1"]            # [B, O, O], [B, 1, O]
    w2, b2 = p["w2"], p["b2"]
    wo_full, bo = p["wo_full"], p["bo"]  # [O, B*O],  [1, O]
    gates = p["gates"]                   # [B]
    B, O, F = wb.shape
    BO = B * O

    wb_all = jnp.concatenate([wb[b].T for b in range(B)], axis=1)     # [F, B*O]
    bb_all = bb[:, 0, :].reshape(1, BO)
    w1_bd = jax.scipy.linalg.block_diag(*[w1[b].T for b in range(B)])  # [B*O, B*O]
    b1_all = b1[:, 0, :].reshape(1, BO)
    w2_bd = jax.scipy.linalg.block_diag(*[w2[b].T for b in range(B)])
    b2_all = b2[:, 0, :].reshape(1, BO)
    # fold per-branch gate scale into the output-layer columns, pre-transpose
    wo_g = (wo_full * jnp.repeat(gates, O)[None, :]).T                 # [B*O, O]
    return wb_all, bb_all, w1_bd, b1_all, w2_bd, b2_all, wo_g, bo


def ddlayer_forward(x, params, *, tile_n=256):
    N, F = x.shape
    wb_all, bb_all, w1_bd, b1_all, w2_bd, b2_all, wo_g, bo = fuse_params(params)
    BO, O = wo_g.shape

    # Tile rows (parallel axis); pad N up so each tile is sublane-aligned.
    tn = min(tile_n, _round_up(N, 8))
    n_pad = _round_up(N, tn)
    if n_pad != N:
        x = jnp.pad(x, ((0, n_pad - N), (0, 0)))

    out = pl.pallas_call(
        ddlayer_kernel,
        out_shape=jax.ShapeDtypeStruct((n_pad, O), jnp.float32),
        grid_spec=pltpu.PrefetchScalarGridSpec(
            num_scalar_prefetch=0,
            grid=(n_pad // tn,),
            in_specs=[
                pl.BlockSpec((tn, F), lambda i: (i, 0)),    # x tile
                pl.BlockSpec((F, BO), lambda i: (0, 0)),    # fused branch weights
                pl.BlockSpec((1, BO), lambda i: (0, 0)),    # fused branch bias
                pl.BlockSpec((BO, BO), lambda i: (0, 0)),   # block-diag w1
                pl.BlockSpec((1, BO), lambda i: (0, 0)),    # b1
                pl.BlockSpec((BO, BO), lambda i: (0, 0)),   # block-diag w2
                pl.BlockSpec((1, BO), lambda i: (0, 0)),    # b2
                pl.BlockSpec((BO, O), lambda i: (0, 0)),    # wo (gates folded)
                pl.BlockSpec((1, O), lambda i: (0, 0)),     # bo
            ],
            out_specs=pl.BlockSpec((tn, O), lambda i: (i, 0)),
        ),
        compiler_params=pltpu.CompilerParams(
            dimension_semantics=("parallel",)),
    )(x, wb_all, bb_all, w1_bd, b1_all, w2_bd, b2_all, wo_g, bo)
    return out[:N]


def make_params(key, num_features, output_dim, num_branches):
    ks = jax.random.split(key, 8)
    B, F, O = num_branches, num_features, output_dim
    wb = 0.1 * jax.random.normal(ks[0], (B, O, F), jnp.float32)
    bb = 0.1 * jax.random.normal(ks[1], (B, 1, O), jnp.float32)
    w1 = 0.1 * jax.random.normal(ks[2], (B, O, O), jnp.float32)
    b1 = 0.1 * jax.random.normal(ks[3], (B, 1, O), jnp.float32)
    w2 = 0.1 * jax.random.normal(ks[4], (B, O, O), jnp.float32)
    b2 = 0.1 * jax.random.normal(ks[5], (B, 1, O), jnp.float32)
    wo_full = 0.1 * jax.random.normal(ks[6], (O, B * O), jnp.float32)
    bo = 0.1 * jax.random.normal(ks[7], (1, O), jnp.float32)
    # branch_gates init = ones, temperature = 1.0 (as in the module __init__)
    branch_gates = jnp.ones((B,), jnp.float32)
    temperature = jnp.float32(1.0)
    gates = jax.nn.softmax(branch_gates / temperature)
    return dict(wb=wb, bb=bb, w1=w1, b1=b1, w2=w2, b2=b2,
                wo_full=wo_full, bo=bo, gates=gates)


def reference(x, p):
    """Pure-JAX reference following the original per-branch PyTorch forward."""
    B = p["wb"].shape[0]
    outs = []
    for b in range(B):
        h = x @ p["wb"][b].T + p["bb"][b, 0]
        h = jnp.maximum(h @ p["w1"][b].T + p["b1"][b, 0], 0.0)
        h = h @ p["w2"][b].T + p["b2"][b, 0]
        h = h * p["gates"][b]
        outs.append(h)
    concat = jnp.concatenate(outs, axis=1)
    return concat @ p["wo_full"].T + p["bo"][0]


if __name__ == "__main__":
    N, num_features, output_dim, num_dendrites = 8, 16, 32, 4
    key = jax.random.PRNGKey(0)
    kx, kp = jax.random.split(key)
    x = jax.random.normal(kx, (N, num_features), jnp.float32)
    params = make_params(kp, num_features, output_dim, num_dendrites)

    out = ddlayer_forward(x, params)
    out = jax.block_until_ready(out)

    ref = reference(x, params)
    assert out.shape == (N, output_dim)
    assert jnp.allclose(out, ref, atol=1e-4, rtol=1e-4), "mismatch vs reference"
    print("KERNEL_OK")
</pallas_src>

<mosaic_0001>
module attributes {stable_mosaic.version = 11 : i64} {
  func.func @ddlayer_kernel(%arg0: i32, %arg1: memref<8x16xf32, #tpu.memory_space<vmem>>, %arg2: memref<16x128xf32, #tpu.memory_space<vmem>>, %arg3: memref<1x128xf32, #tpu.memory_space<vmem>>, %arg4: memref<128x128xf32, #tpu.memory_space<vmem>>, %arg5: memref<1x128xf32, #tpu.memory_space<vmem>>, %arg6: memref<128x128xf32, #tpu.memory_space<vmem>>, %arg7: memref<1x128xf32, #tpu.memory_space<vmem>>, %arg8: memref<128x32xf32, #tpu.memory_space<vmem>>, %arg9: memref<1x32xf32, #tpu.memory_space<vmem>>, %arg10: memref<8x32xf32, #tpu.memory_space<vmem>>) attributes {dimension_semantics = [#tpu.dimension_semantics<parallel>], iteration_bounds = array<i64: 1>, scalar_prefetch = 0 : i64, scratch_operands = 0 : i64, tpu.core_type = #tpu.core_type<tc>, window_params = [{transform_indices = @transform_0, window_bounds = array<i64: 8, 16>}, {pipeline_mode = #tpu.pipeline_mode<synchronous>, transform_indices = @transform_1, window_bounds = array<i64: 16, 128>}, {pipeline_mode = #tpu.pipeline_mode<synchronous>, transform_indices = @transform_2, window_bounds = array<i64: 1, 128>}, {pipeline_mode = #tpu.pipeline_mode<synchronous>, transform_indices = @transform_3, window_bounds = array<i64: 128, 128>}, {pipeline_mode = #tpu.pipeline_mode<synchronous>, transform_indices = @transform_4, window_bounds = array<i64: 1, 128>}, {pipeline_mode = #tpu.pipeline_mode<synchronous>, transform_indices = @transform_5, window_bounds = array<i64: 128, 128>}, {pipeline_mode = #tpu.pipeline_mode<synchronous>, transform_indices = @transform_6, window_bounds = array<i64: 1, 128>}, {pipeline_mode = #tpu.pipeline_mode<synchronous>, transform_indices = @transform_7, window_bounds = array<i64: 128, 32>}, {pipeline_mode = #tpu.pipeline_mode<synchronous>, transform_indices = @transform_8, window_bounds = array<i64: 1, 32>}, {transform_indices = @transform_9, window_bounds = array<i64: 8, 32>}]} {
    %c0 = arith.constant 0 : index
    %c0_0 = arith.constant 0 : index
    %0 = vector.load %arg1[%c0, %c0_0] : memref<8x16xf32, #tpu.memory_space<vmem>>, vector<8x16xf32>
    %c0_1 = arith.constant 0 : index
    %c0_2 = arith.constant 0 : index
    %1 = vector.load %arg2[%c0_1, %c0_2] : memref<16x128xf32, #tpu.memory_space<vmem>>, vector<16x128xf32>
    %cst = arith.constant dense<0.000000e+00> : vector<8x128xf32>
    %2 = tpu.matmul %0, %1, %cst {dimension_numbers = #tpu.dot_dimension_numbers<[1], [0], [0], [1], [0, 0, 1, 1], [], []>} : vector<8x16xf32>, vector<16x128xf32>, vector<8x128xf32> -> vector<8x128xf32>
    %c0_3 = arith.constant 0 : index
    %c0_4 = arith.constant 0 : index
    %3 = vector.load %arg3[%c0_3, %c0_4] : memref<1x128xf32, #tpu.memory_space<vmem>>, vector<1x128xf32>
    %4 = vector.broadcast %3 : vector<1x128xf32> to vector<8x128xf32>
    %5 = arith.addf %2, %4 : vector<8x128xf32>
    %c0_5 = arith.constant 0 : index
    %c0_6 = arith.constant 0 : index
    %6 = vector.load %arg4[%c0_5, %c0_6] : memref<128x128xf32, #tpu.memory_space<vmem>>, vector<128x128xf32>
    %cst_7 = arith.constant dense<0.000000e+00> : vector<8x128xf32>
    %7 = tpu.matmul %5, %6, %cst_7 {dimension_numbers = #tpu.dot_dimension_numbers<[1], [0], [0], [1], [0, 0, 1, 1], [], []>} : vector<8x128xf32>, vector<128x128xf32>, vector<8x128xf32> -> vector<8x128xf32>
    %c0_8 = arith.constant 0 : index
    %c0_9 = arith.constant 0 : index
    %8 = vector.load %arg5[%c0_8, %c0_9] : memref<1x128xf32, #tpu.memory_space<vmem>>, vector<1x128xf32>
    %9 = vector.broadcast %8 : vector<1x128xf32> to vector<8x128xf32>
    %10 = arith.addf %7, %9 : vector<8x128xf32>
    %cst_10 = arith.constant 0.000000e+00 : f32
    %11 = vector.broadcast %cst_10 : f32 to vector<8x128xf32>
    %12 = arith.maximumf %10, %11 : vector<8x128xf32>
    %c0_11 = arith.constant 0 : index
    %c0_12 = arith.constant 0 : index
    %13 = vector.load %arg6[%c0_11, %c0_12] : memref<128x128xf32, #tpu.memory_space<vmem>>, vector<128x128xf32>
    %cst_13 = arith.constant dense<0.000000e+00> : vector<8x128xf32>
    %14 = tpu.matmul %12, %13, %cst_13 {dimension_numbers = #tpu.dot_dimension_numbers<[1], [0], [0], [1], [0, 0, 1, 1], [], []>} : vector<8x128xf32>, vector<128x128xf32>, vector<8x128xf32> -> vector<8x128xf32>
    %c0_14 = arith.constant 0 : index
    %c0_15 = arith.constant 0 : index
    %15 = vector.load %arg7[%c0_14, %c0_15] : memref<1x128xf32, #tpu.memory_space<vmem>>, vector<1x128xf32>
    %16 = vector.broadcast %15 : vector<1x128xf32> to vector<8x128xf32>
    %17 = arith.addf %14, %16 : vector<8x128xf32>
    %c0_16 = arith.constant 0 : index
    %c0_17 = arith.constant 0 : index
    %18 = vector.load %arg8[%c0_16, %c0_17] : memref<128x32xf32, #tpu.memory_space<vmem>>, vector<128x32xf32>
    %cst_18 = arith.constant dense<0.000000e+00> : vector<8x32xf32>
    %19 = tpu.matmul %17, %18, %cst_18 {dimension_numbers = #tpu.dot_dimension_numbers<[1], [0], [0], [1], [0, 0, 1, 1], [], []>} : vector<8x128xf32>, vector<128x32xf32>, vector<8x32xf32> -> vector<8x32xf32>
    %c0_19 = arith.constant 0 : index
    %c0_20 = arith.constant 0 : index
    %20 = vector.load %arg9[%c0_19, %c0_20] : memref<1x32xf32, #tpu.memory_space<vmem>>, vector<1x32xf32>
    %21 = vector.broadcast %20 : vector<1x32xf32> to vector<8x32xf32>
    %22 = arith.addf %19, %21 : vector<8x32xf32>
    %c0_21 = arith.constant 0 : index
    %c0_22 = arith.constant 0 : index
    %23 = vector.load %arg10[%c0_21, %c0_22] : memref<8x32xf32, #tpu.memory_space<vmem>>, vector<8x32xf32>
    tpu.vector_store %arg10[%c0_21, %c0_22], %22 {strides = array<i32>} : memref<8x32xf32, #tpu.memory_space<vmem>>, vector<8x32xf32>,
    return
  }
  func.func @transform_0(%arg0: i32) -> (i32, i32) {
    %c0_i32 = arith.constant 0 : i32
    %c0_i32_0 = arith.constant 0 : i32
    return %arg0, %c0_i32 : i32, i32
  }
  func.func @transform_1(%arg0: i32) -> (i32, i32) {
    %c0_i32 = arith.constant 0 : i32
    %c0_i32_0 = arith.constant 0 : i32
    %c0_i32_1 = arith.constant 0 : i32
    return %c0_i32, %c0_i32_0 : i32, i32
  }
  func.func @transform_2(%arg0: i32) -> (i32, i32) {
    %c0_i32 = arith.constant 0 : i32
    %c0_i32_0 = arith.constant 0 : i32
    %c0_i32_1 = arith.constant 0 : i32
    return %c0_i32, %c0_i32_0 : i32, i32
  }
  func.func @transform_3(%arg0: i32) -> (i32, i32) {
    %c0_i32 = arith.constant 0 : i32
    %c0_i32_0 = arith.constant 0 : i32
    %c0_i32_1 = arith.constant 0 : i32
    return %c0_i32, %c0_i32_0 : i32, i32
  }
  func.func @transform_4(%arg0: i32) -> (i32, i32) {
    %c0_i32 = arith.constant 0 : i32
    %c0_i32_0 = arith.constant 0 : i32
    %c0_i32_1 = arith.constant 0 : i32
    return %c0_i32, %c0_i32_0 : i32, i32
  }
  func.func @transform_5(%arg0: i32) -> (i32, i32) {
    %c0_i32 = arith.constant 0 : i32
    %c0_i32_0 = arith.constant 0 : i32
    %c0_i32_1 = arith.constant 0 : i32
    return %c0_i32, %c0_i32_0 : i32, i32
  }
  func.func @transform_6(%arg0: i32) -> (i32, i32) {
    %c0_i32 = arith.constant 0 : i32
    %c0_i32_0 = arith.constant 0 : i32
    %c0_i32_1 = arith.constant 0 : i32
    return %c0_i32, %c0_i32_0 : i32, i32
  }
  func.func @transform_7(%arg0: i32) -> (i32, i32) {
    %c0_i32 = arith.constant 0 : i32
    %c0_i32_0 = arith.constant 0 : i32
    %c0_i32_1 = arith.constant 0 : i32
    return %c0_i32, %c0_i32_0 : i32, i32
  }
  func.func @transform_8(%arg0: i32) -> (i32, i32) {
    %c0_i32 = arith.constant 0 : i32
    %c0_i32_0 = arith.constant 0 : i32
    %c0_i32_1 = arith.constant 0 : i32
    return %c0_i32, %c0_i32_0 : i32, i32
  }
  func.func @transform_9(%arg0: i32) -> (i32, i32) {
    %c0_i32 = arith.constant 0 : i32
    %c0_i32_0 = arith.constant 0 : i32
    return %arg0, %c0_i32 : i32, i32
  }
}

</mosaic_0001>

<bundles_post_ra>
// kernel: tpu_custom_call.1
= control target key start
LH: loop header
LB: loop body
LE: loop exit
PB: predicated region body
PF: predicated region fallthrough
CT: control target
= control target key end

     0   :  { %14 = vsyncpa [#allocation3], 0  ;;  %s458_s0 = inlined_call_operand.vmem [shape: f32[8,16], index: 0, kind: input, shape index: {}]   ;;  %s459_s1 = inlined_call_operand.vmem [shape: f32[16,128], index: 1, kind: input, shape index: {}]   ;;  %s460_s2 = inlined_call_operand.vmem [shape: f32[1,128], index: 2, kind: input, shape index: {}]   ;;  %s461_s3 = inlined_call_operand.vmem [shape: f32[128,128], index: 3, kind: input, shape index: {}]   ;;  %s462_s4 = inlined_call_operand.vmem [shape: f32[1,128], index: 4, kind: input, shape index: {}]   ;;  %s463_s5 = inlined_call_operand.hbm [shape: f32[128,128], index: 5, kind: input, shape index: {}]   ;;  %s464_s6 = inlined_call_operand.vmem [shape: f32[1,128], index: 6, kind: input, shape index: {}]   ;;  %s465_s7 = inlined_call_operand.vmem [shape: f32[128,32], index: 7, kind: input, shape index: {}]   ;;  %s466_s8 = inlined_call_operand.vmem [shape: f32[1,32], index: 8, kind: input, shape index: {}]   ;;  %s467_s9 = inlined_call_operand.hbm [shape: f32[8,32], index: 9, kind: output, shape index: {}]  }
   0x1   :  { %15 = vsyncpa [#allocation4], 0  ;;  %s30_s11 = sshll.u32 %s463_s5, 4  ;;  %s281_s12 = smov [#allocation2]   ;;  %s31_s11 = int_to_ptr.hbm [resolvable:$true] %s30_s11 }
   0x2   :  { %s32_s13 = sshll.u32 %s281_s12, 4  ;;  %s282_s14 = smov 128   ;;  %s33_s13 = int_to_ptr.vmem [resolvable:$true] %s32_s13 }
   0x3   :  { %s283_s15 = smov 8  }
   0x4   :  { %38 = dma.hbm_to_vmem [thread:$0]  %s31_s11, 2048, %s33_s13, [#allocation3], %s282_s14, %s282_s14, %s283_s15  }
   0x5   :  { %277 = dma.done.wait [#allocation3], 2048  }
   0x6   :  { %278 = vsyncadd [#allocation3], 4294965248  ;;  %v51_v0 = vld [vmem:[%s459_s1 + $0x8] sm:$0xff]  ;;  %v50_v1 = vld [vmem:[%s459_s1] sm:$0xff]  ;;  %vm56_vm0 = vcmask 130048   ;;  %s284_s17 = smov [#allocation5]  }
   0x7   :  { %74 = vmatpush.msra.mxu0 %v51_v0  ;;  %v49_v2 = vld [vmem:[%s458_s0] sm:$0xff]  ;;  %v95_v3 = vld [vmem:[%s461_s3 + $0x78] sm:$0xff]  ;;  %v94_v4 = vld [vmem:[%s461_s3 + $0x70] sm:$0xff]  ;;  %s208_s18 = sshll.u32 %s284_s17, 4  ;;  %s210_s5 = sshll.u32 %s467_s9, 4  ;;  %vm201_vm1 = vcmask 261120   ;;  %s209_s18 = int_to_ptr.vmem [resolvable:$true] %s208_s18  ;;  %s211_s5 = int_to_ptr.hbm [resolvable:$true] %s210_s5 }
   0x8   :  { %100 = vmatpush.msra.mxu1 %v95_v3  ;;  %v93_v5 = vld [vmem:[%s461_s3 + $0x68] sm:$0xff]  ;;  %v92_v6 = vld [vmem:[%s461_s3 + $0x60] sm:$0xff]  ;;  %v91_v7 = vld [vmem:[%s461_s3 + $0x58] sm:$0xff] }
   0x9   :  { %75 = vmatpush.msra.mxu0 %v50_v1  ;;  %v90_v8 = vld [vmem:[%s461_s3 + $0x50] sm:$0xff]  ;;  %v89_v9 = vld [vmem:[%s461_s3 + $0x48] sm:$0xff]  ;;  %v88_v10 = vld [vmem:[%s461_s3 + $0x40] sm:$0xff] }
   0xa   :  { %220 = vmatmul.msk.f32.vlgmr.msra.gmra.mxu0 %vm56_vm0, %v49_v2  ;;  %101 = vmatpush.msra.mxu1 %v94_v4  ;;  %v87_v11 = vld [vmem:[%s461_s3 + $0x38] sm:$0xff]  ;;  %v86_v12 = vld [vmem:[%s461_s3 + $0x30] sm:$0xff]  ;;  %v85_v13 = vld [vmem:[%s461_s3 + $0x28] sm:$0xff] }
   0xb   :  { %v84_v14 = vld [vmem:[%s461_s3 + $0x20] sm:$0xff]  ;;  %v83_v15 = vld [vmem:[%s461_s3 + $0x18] sm:$0xff]  ;;  %v82_v16 = vld [vmem:[%s461_s3 + $0x10] sm:$0xff] }
   0xc   :  { %102 = vmatpush.msra.mxu1 %v93_v5  ;;  %v81_v17 = vld [vmem:[%s461_s3 + $0x8] sm:$0xff]  ;;  %v80_v18 = vld [vmem:[%s461_s3] sm:$0xff]  ;;  %v136_v19 = vld [vmem:[#allocation2 + $0x78] sm:$0xff] }
   0xd   :  { %v135_v20 = vld [vmem:[#allocation2 + $0x70] sm:$0xff]  ;;  %141 = vmatpush.msra.mxu2 %v136_v19  ;;  %v134_v21 = vld [vmem:[#allocation2 + $0x68] sm:$0xff]  ;;  %v133_v22 = vld [vmem:[#allocation2 + $0x60] sm:$0xff] }
   0xe   :  { %103 = vmatpush.msra.mxu1 %v92_v6  ;;  %v132_v23 = vld [vmem:[#allocation2 + $0x58] sm:$0xff]  ;;  %v131_v24 = vld [vmem:[#allocation2 + $0x50] sm:$0xff]  ;;  %v130_v25 = vld [vmem:[#allocation2 + $0x48] sm:$0xff] }
   0xf   :  { %142 = vmatpush.msra.mxu2 %v135_v20  ;;  %v129_v26 = vld [vmem:[#allocation2 + $0x40] sm:$0xff]  ;;  %v128_v27 = vld [vmem:[#allocation2 + $0x38] sm:$0xff]  ;;  %v127_v28 = vld [vmem:[#allocation2 + $0x30] sm:$0xff] }
  0x10   :  { %104 = vmatpush.msra.mxu1 %v91_v7  ;;  %v126_v29 = vld [vmem:[#allocation2 + $0x28] sm:$0xff]  ;;  %v125_v30 = vld [vmem:[#allocation2 + $0x20] sm:$0xff]  ;;  %v124_v31 = vld [vmem:[#allocation2 + $0x18] sm:$0xff] }
  0x11   :  { %143 = vmatpush.msra.mxu2 %v134_v21  ;;  %v225_v32 = vld [vmem:[%s460_s2] ss:$0 sm:$0xff]  ;;  %v123_v35 = vld [vmem:[#allocation2 + $0x10] sm:$0xff]  ;;  %v122_v36 = vld [vmem:[#allocation2 + $0x8] sm:$0xff] }
  0x12   :  { %105 = vmatpush.msra.mxu1 %v90_v8  ;;  %v121_v37 = vld [vmem:[#allocation2] sm:$0xff]  ;;  %v176_v38 = vld [vmem:[%s465_s7 + $0x78] sm:$0xff]  ;;  %v175_v39 = vld [vmem:[%s465_s7 + $0x70] sm:$0xff] }
  0x13   :  { %144 = vmatpush.msra.mxu2 %v133_v22  ;;  %181 = vmatpush.msra.mxu3 %v176_v38  ;;  %v174_v40 = vld [vmem:[%s465_s7 + $0x68] sm:$0xff]  ;;  %v173_v41 = vld [vmem:[%s465_s7 + $0x60] sm:$0xff]  ;;  %v172_v42 = vld [vmem:[%s465_s7 + $0x58] sm:$0xff] }
  0x14   :  { %106 = vmatpush.msra.mxu1 %v89_v9  ;;  %v171_v43 = vld [vmem:[%s465_s7 + $0x50] sm:$0xff]  ;;  %v170_v44 = vld [vmem:[%s465_s7 + $0x48] sm:$0xff]  ;;  %v169_v45 = vld [vmem:[%s465_s7 + $0x40] sm:$0xff] }
  0x15   :  { %145 = vmatpush.msra.mxu2 %v132_v23  ;;  %182 = vmatpush.msra.mxu3 %v175_v39  ;;  %v168_v46 = vld [vmem:[%s465_s7 + $0x38] sm:$0xff]  ;;  %v167_v47 = vld [vmem:[%s465_s7 + $0x30] sm:$0xff]  ;;  %v166_v48 = vld [vmem:[%s465_s7 + $0x28] sm:$0xff] }
  0x16   :  { %107 = vmatpush.msra.mxu1 %v88_v10  ;;  %v165_v49 = vld [vmem:[%s465_s7 + $0x20] sm:$0xff]  ;;  %v164_v50 = vld [vmem:[%s465_s7 + $0x18] sm:$0xff]  ;;  %v163_v52 = vld [vmem:[%s465_s7 + $0x10] sm:$0xff] }
  0x17   :  { %146 = vmatpush.msra.mxu2 %v131_v24  ;;  %183 = vmatpush.msra.mxu3 %v174_v40  ;;  %v226_v51 = vld [vmem:[%s462_s4] ss:$0 sm:$0xff]  ;;  %v162_v56 = vld [vmem:[%s465_s7 + $0x8] sm:$0xff] }
  0x18   :  { %108 = vmatpush.msra.mxu1 %v87_v11  ;;  %v161_v57 = vld [vmem:[%s465_s7] sm:$0xff] }
  0x19   :  { %147 = vmatpush.msra.mxu2 %v130_v25  ;;  %184 = vmatpush.msra.mxu3 %v173_v41  ;;  %v227_v58 = vld [vmem:[%s464_s6] ss:$0 sm:$0xff] }
  0x1a   :  { %109 = vmatpush.msra.mxu1 %v86_v12  ;;  %v228_v61 = vld [vmem:[%s466_s8] ss:$0 sm:$0xff] }
  0x1b   :  { %148 = vmatpush.msra.mxu2 %v129_v26  ;;  %185 = vmatpush.msra.mxu3 %v172_v42 }
  0x1c   :  { %110 = vmatpush.msra.mxu1 %v85_v13 }
  0x1d   :  { %149 = vmatpush.msra.mxu2 %v128_v27  ;;  %186 = vmatpush.msra.mxu3 %v171_v43 }
  0x1e   :  { %111 = vmatpush.msra.mxu1 %v84_v14 }
  0x1f   :  { %150 = vmatpush.msra.mxu2 %v127_v28  ;;  %187 = vmatpush.msra.mxu3 %v170_v44 }
  0x20   :  { %112 = vmatpush.msra.mxu1 %v83_v15 }
  0x21   :  { %151 = vmatpush.msra.mxu2 %v126_v29  ;;  %188 = vmatpush.msra.mxu3 %v169_v45 }
  0x22   :  { %113 = vmatpush.msra.mxu1 %v82_v16 }
  0x23   :  { %152 = vmatpush.msra.mxu2 %v125_v30  ;;  %189 = vmatpush.msra.mxu3 %v168_v46 }
  0x24   :  { %114 = vmatpush.msra.mxu1 %v81_v17 }
  0x25   :  { %153 = vmatpush.msra.mxu2 %v124_v31  ;;  %190 = vmatpush.msra.mxu3 %v167_v47 }
  0x26   :  { %115 = vmatpush.msra.mxu1 %v80_v18 }
  0x27   :  { %154 = vmatpush.msra.mxu2 %v123_v35  ;;  %191 = vmatpush.msra.mxu3 %v166_v48 }
  0x29   :  { %155 = vmatpush.msra.mxu2 %v122_v36  ;;  %192 = vmatpush.msra.mxu3 %v165_v49 }
  0x2b   :  { %156 = vmatpush.msra.mxu2 %v121_v37  ;;  %193 = vmatpush.msra.mxu3 %v164_v50 }
  0x2d   :  { %194 = vmatpush.msra.mxu3 %v163_v52 }
  0x2f   :  { %195 = vmatpush.msra.mxu3 %v162_v56 }
  0x31   :  { %196 = vmatpush.msra.mxu3 %v161_v57 }
  0x87   :  { %v77_v33 = vpop.f32.mrf.mxu0 }
  0x88   :  { %v78_v34 = vadd.f32 %v225_v32, %v77_v33 }
  0x8a   :  { %116 = vmatmul.f32.vlgmr.msra.gmra.mxu1 %v78_v34 }
 0x107   :  { %v117_v53 = vpop.f32.mrf.mxu1 }
 0x108   :  { %v118_v54 = vadd.f32 %v226_v51, %v117_v53 }
 0x10a   :  { %v120_v55 = vmax.f32 %v118_v54, 0.0 }
 0x10c   :  { %157 = vmatmul.f32.vlgmr.msra.gmra.mxu2 %v120_v55 }
 0x18f   :  { %v158_v59 = vpop.f32.mrf.mxu2 }
 0x190   :  { %v159_v60 = vadd.f32 %v227_v58, %v158_v59 }
 0x192   :  { %197 = vmatmul.f32.vlgmr.msra.gmra.mxu3 %v159_v60 }
 0x215   :  { %v198_v62 = vpop.f32.mrf.mxu3 }
 0x216   :  { %v199_v63 = vadd.f32 %v228_v61, %v198_v62 }
 0x218   :  { %202 = vst.msk [vmem:[#allocation5] sm:$0xff] %vm201_vm1, %v199_v63 }
 0x219   :  { %213 = dma.vmem_to_hbm [thread:$0]  %s209_s18, 128, %s211_s5, [#allocation4]  }
 0x21a   :  { %279 = dma.done.wait [#allocation4], 128  }
 0x21b   :  { %280 = vsyncadd [#allocation4], 4294967168 }
 0x21c   :  { %218 = vsyncpa [#allocation3], 1 }
 0x21d   :  { %219 = vsyncpa [#allocation4], 1 }

</bundles_post_ra>
